<compile_context>
chip_gen: v7x
topology: tpu7x:2x2x1
jax: 0.10.0
libtpu: 0.0.40
codegen_flags: <defaults>
</compile_context>

<pallas_src>
import jax
import jax.numpy as jnp
import numpy as np
from jax.experimental import pallas as pl
from jax.experimental.pallas import tpu as pltpu


# ----------------------------------------------------------------------------
# Fused kernel: per-crop projection (MXU) + avg-pool row + masked max over crops
# ----------------------------------------------------------------------------
def fused_kernel(valid_ref, x_ref, w_ref, o_ref):
    # valid_ref: SMEM int32 [B*N]          (scalar prefetch; 1 = keep crop)
    # x_ref:     (1, 1, 56, Kp) bf16       rows 0..48 = im2col patches,
    #                                      row 49 = mean of rows 0..48,
    #                                      rows 50..55 = 0; column K = 1 (bias)
    # w_ref:     (Kp, f_tile) bf16         row K holds the bias, rest zero-pad
    # o_ref:     (1, 56, f_tile) f32       resident across the crop (n) axis
    b = pl.program_id(0)
    n = pl.program_id(2)
    n_crops = pl.num_programs(2)

    @pl.when(n == 0)
    def _init():
        # If every crop of a batch element is all-zero the slab stays -inf
        # (the PyTorch reference would raise on an empty max in that case).
        o_ref[...] = jnp.full(o_ref.shape, -jnp.inf, dtype=o_ref.dtype)

    @pl.when(valid_ref[b * n_crops + n] != 0)
    def _update():
        x = x_ref[0, 0]                                            # [56, Kp] bf16
        y = jnp.dot(x, w_ref[...], preferred_element_type=jnp.float32)
        o_ref[...] = jnp.maximum(o_ref[...], y[None])              # [1, 56, f_tile]


# ----------------------------------------------------------------------------
# Wrapper
# ----------------------------------------------------------------------------
def visual_extractor_pre_object(images, w_proj, b_proj):
    """images: [B, N, C, H, W] float32 (H = W = 7 * P).
    Returns (patch_feats [B, 49, F], avg_feats [B, F])."""
    B, N, C, H, W = images.shape
    K, F = w_proj.shape
    P = H // 7
    assert H == 7 * P and W == 7 * P and K == C * P * P

    f_tile = 512 if F % 512 == 0 else F            # F-tiling (v7x VMEM headroom)
    Kp = ((K + 1 + 127) // 128) * 128              # +1 bias column, lane-pad to 128

    # mask = images_crop.sum(dim=(1,2,3)); crops with zero sum are excluded
    valid = (jnp.sum(images, axis=(2, 3, 4)) != 0).astype(jnp.int32).reshape(B * N)

    # im2col + avg-pool row + bias column + padding + bf16 cast (one fused XLA
    # pass under jit; the patch rearrange itself stays in the wrapper).
    xp = images.reshape(B, N, C, 7, P, 7, P)
    patches = xp.transpose(0, 1, 3, 5, 2, 4, 6).reshape(B, N, 49, K)      # [B,N,49,K]
    mean_row = jnp.mean(patches, axis=2, keepdims=True)                   # [B,N,1,K]
    rows = jnp.concatenate([patches, mean_row], axis=2)                   # [B,N,50,K]
    ones = jnp.ones((B, N, 50, 1), dtype=rows.dtype)
    rows = jnp.concatenate([rows, ones], axis=3)                          # [B,N,50,K+1]
    rows = jnp.pad(rows, ((0, 0), (0, 0), (0, 6), (0, Kp - (K + 1))))     # [B,N,56,Kp]
    rows = rows.astype(jnp.bfloat16)

    # augmented weights: row K holds the bias; zero-pad to [Kp, F]
    w_aug = jnp.concatenate([w_proj, b_proj.reshape(1, F)], axis=0)       # [K+1,F]
    w_aug = jnp.pad(w_aug, ((0, Kp - (K + 1)), (0, 0))).astype(jnp.bfloat16)

    out = pl.pallas_call(
        fused_kernel,
        out_shape=jax.ShapeDtypeStruct((B, 56, F), jnp.float32),
        grid_spec=pltpu.PrefetchScalarGridSpec(
            num_scalar_prefetch=1,
            grid=(B, F // f_tile, N),                     # crop axis last (reduction)
            in_specs=[
                pl.BlockSpec((1, 1, 56, Kp), lambda b, f, n, v: (b, n, 0, 0)),
                pl.BlockSpec((Kp, f_tile), lambda b, f, n, v: (0, f)),
            ],
            out_specs=pl.BlockSpec((1, 56, f_tile), lambda b, f, n, v: (b, 0, f)),
        ),
        compiler_params=pltpu.CompilerParams(
            dimension_semantics=("parallel", "parallel", "arbitrary")),
    )(valid, rows, w_aug)

    patch_feats = out[:, :49, :]        # rows 0..48  -> [B, 49, F]
    avg_feats = out[:, 49, :]           # row 49 (MXU avg-pool) -> [B, F]
    return patch_feats, avg_feats


# ----------------------------------------------------------------------------
# Pure numpy reference (mirrors the PyTorch forward)
# ----------------------------------------------------------------------------
def reference(images, w_proj, b_proj):
    images = np.asarray(images)
    w = np.asarray(w_proj)
    b = np.asarray(b_proj)
    B, N, C, H, W = images.shape
    K, F = w.shape
    P = H // 7
    patch_list, avg_list = [], []
    for bs in range(B):
        crops = images[bs]
        mask = crops.sum(axis=(1, 2, 3))
        crops = crops[mask != 0]
        n = crops.shape[0]
        xp = crops.reshape(n, C, 7, P, 7, P).transpose(0, 2, 4, 1, 3, 5)
        pat = xp.reshape(n, 49, K) @ w + b                    # [n, 49, F]
        avg = pat.mean(axis=1)                                # [n, F]
        patch_list.append(pat.max(axis=0))                    # [49, F]
        avg_list.append(avg.max(axis=0))                      # [F]
    return np.stack(patch_list, 0), np.stack(avg_list, 0)


if __name__ == "__main__":
    B, N, C, H, W = 2, 3, 3, 14, 14   # 14x14 crops -> 7x7 feature grid
    F = 128                           # synthetic backbone feature size
    P = H // 7
    K = C * P * P

    key = jax.random.PRNGKey(0)
    k_x, k_w, k_b = jax.random.split(key, 3)
    images = jax.random.normal(k_x, (B, N, C, H, W), dtype=jnp.float32)
    # make one crop all-zero to exercise the mask-filtering path
    images = images.at[1, 2].set(0.0)

    w_proj = 0.05 * jax.random.normal(k_w, (K, F), dtype=jnp.float32)
    b_proj = 0.01 * jax.random.normal(k_b, (F,), dtype=jnp.float32)

    fn = jax.jit(visual_extractor_pre_object)
    patch_feats, avg_feats = fn(images, w_proj, b_proj)
    patch_feats = jax.block_until_ready(patch_feats)
    avg_feats = jax.block_until_ready(avg_feats)

    assert patch_feats.shape == (B, 49, F)
    assert avg_feats.shape == (B, F)

    ref_patch, ref_avg = reference(images, w_proj, b_proj)
    # bf16 MXU operands (f32 accumulation) -> slightly looser tolerance
    np.testing.assert_allclose(np.asarray(patch_feats), ref_patch, rtol=2e-2, atol=2e-2)
    np.testing.assert_allclose(np.asarray(avg_feats), ref_avg, rtol=2e-2, atol=2e-2)

    print("KERNEL_OK")
</pallas_src>

<mosaic_0001>
module attributes {stable_mosaic.version = 11 : i64} {
  func.func @fused_kernel(%arg0: i32, %arg1: i32, %arg2: i32, %arg3: memref<6xi32, #tpu.memory_space<smem>>, %arg4: memref<1x1x56x128xbf16, #tpu.memory_space<vmem>>, %arg5: memref<128x128xbf16, #tpu.memory_space<vmem>>, %arg6: memref<1x56x128xf32, #tpu.memory_space<vmem>>) attributes {dimension_semantics = [#tpu.dimension_semantics<parallel>, #tpu.dimension_semantics<parallel>, #tpu.dimension_semantics<arbitrary>], iteration_bounds = array<i64: 2, 1, 3>, scalar_prefetch = 1 : i64, scratch_operands = 0 : i64, tpu.core_type = #tpu.core_type<tc>, window_params = [{transform_indices = @transform_0, window_bounds = array<i64: 1, 1, 56, 128>}, {transform_indices = @transform_1, window_bounds = array<i64: 128, 128>}, {transform_indices = @transform_2, window_bounds = array<i64: 1, 56, 128>}]} {
    %c0_i32 = arith.constant 0 : i32
    %0 = arith.cmpi eq, %arg2, %c0_i32 : i32
    %1 = arith.extui %0 : i1 to i32
    %c0_i32_0 = arith.constant 0 : i32
    %2 = arith.cmpi ne, %1, %c0_i32_0 : i32
    scf.if %2 {
      %cst = arith.constant 0xFF800000 : f32
      %10 = vector.broadcast %cst : f32 to vector<1x56x128xf32>
      %c0 = arith.constant 0 : index
      %c0_3 = arith.constant 0 : index
      %c0_4 = arith.constant 0 : index
      %11 = vector.load %arg6[%c0, %c0_3, %c0_4] : memref<1x56x128xf32, #tpu.memory_space<vmem>>, vector<1x56x128xf32>
      tpu.vector_store %arg6[%c0, %c0_3, %c0_4], %10 {strides = array<i32>} : memref<1x56x128xf32, #tpu.memory_space<vmem>>, vector<1x56x128xf32>,
    } else {
    }
    %c3_i32 = arith.constant 3 : i32
    %3 = arith.muli %arg0, %c3_i32 : i32
    %4 = arith.addi %3, %arg2 : i32
    %5 = arith.index_cast %4 : i32 to index
    %6 = memref.load %arg3[%5] : memref<6xi32, #tpu.memory_space<smem>>
    %c0_i32_1 = arith.constant 0 : i32
    %7 = arith.cmpi ne, %6, %c0_i32_1 : i32
    %8 = arith.extui %7 : i1 to i32
    %c0_i32_2 = arith.constant 0 : i32
    %9 = arith.cmpi ne, %8, %c0_i32_2 : i32
    scf.if %9 {
      %c0 = arith.constant 0 : index
      %c0_3 = arith.constant 0 : index
      %c0_4 = arith.constant 0 : index
      %c0_5 = arith.constant 0 : index
      %10 = vector.load %arg4[%c0, %c0_3, %c0_4, %c0_5] : memref<1x1x56x128xbf16, #tpu.memory_space<vmem>>, vector<1x1x56x128xbf16>
      %11 = vector.shape_cast %10 : vector<1x1x56x128xbf16> to vector<56x128xbf16>
      %c0_6 = arith.constant 0 : index
      %c0_7 = arith.constant 0 : index
      %12 = vector.load %arg5[%c0_6, %c0_7] : memref<128x128xbf16, #tpu.memory_space<vmem>>, vector<128x128xbf16>
      %cst = arith.constant dense<0.000000e+00> : vector<56x128xf32>
      %13 = tpu.matmul %11, %12, %cst {dimension_numbers = #tpu.dot_dimension_numbers<[1], [0], [0], [1], [0, 0, 1, 1], [], []>} : vector<56x128xbf16>, vector<128x128xbf16>, vector<56x128xf32> -> vector<56x128xf32>
      %c0_8 = arith.constant 0 : index
      %c0_9 = arith.constant 0 : index
      %c0_10 = arith.constant 0 : index
      %14 = vector.load %arg6[%c0_8, %c0_9, %c0_10] : memref<1x56x128xf32, #tpu.memory_space<vmem>>, vector<1x56x128xf32>
      %15 = vector.shape_cast %13 : vector<56x128xf32> to vector<1x56x128xf32>
      %16 = arith.maximumf %14, %15 : vector<1x56x128xf32>
      %c0_11 = arith.constant 0 : index
      %c0_12 = arith.constant 0 : index
      %c0_13 = arith.constant 0 : index
      %17 = vector.load %arg6[%c0_11, %c0_12, %c0_13] : memref<1x56x128xf32, #tpu.memory_space<vmem>>, vector<1x56x128xf32>
      tpu.vector_store %arg6[%c0_11, %c0_12, %c0_13], %16 {strides = array<i32>} : memref<1x56x128xf32, #tpu.memory_space<vmem>>, vector<1x56x128xf32>,
    } else {
    }
    return
  }
  func.func @transform_0(%arg0: i32, %arg1: i32, %arg2: i32, %arg3: memref<6xi32, #tpu.memory_space<smem>>) -> (i32, i32, i32, i32) {
    %c0_i32 = arith.constant 0 : i32
    %c0_i32_0 = arith.constant 0 : i32
    %c0_i32_1 = arith.constant 0 : i32
    return %arg0, %arg2, %c0_i32, %c0_i32_0 : i32, i32, i32, i32
  }
  func.func @transform_1(%arg0: i32, %arg1: i32, %arg2: i32, %arg3: memref<6xi32, #tpu.memory_space<smem>>) -> (i32, i32) {
    %c0_i32 = arith.constant 0 : i32
    %c0_i32_0 = arith.constant 0 : i32
    return %c0_i32, %arg1 : i32, i32
  }
  func.func @transform_2(%arg0: i32, %arg1: i32, %arg2: i32, %arg3: memref<6xi32, #tpu.memory_space<smem>>) -> (i32, i32, i32) {
    %c0_i32 = arith.constant 0 : i32
    %c0_i32_0 = arith.constant 0 : i32
    return %arg0, %c0_i32, %arg1 : i32, i32, i32
  }
}

</mosaic_0001>

<bundles_post_ra>
// kernel: visual_extractor_pre_object.1
= control target key start
LH: loop header
LB: loop body
LE: loop exit
PB: predicated region body
PF: predicated region fallthrough
CT: control target
= control target key end

     0   :  { %s841_s0 = inlined_call_operand.vmem [shape: s32[6], index: 0, kind: input, shape index: {}]   ;;  %s842_s1 = inlined_call_operand.vmem [shape: bf16[2,3,56,128], index: 1, kind: input, shape index: {}]   ;;  %s843_s2 = inlined_call_operand.vmem [shape: bf16[128,128], index: 2, kind: input, shape index: {}]   ;;  %s844_s3 = inlined_call_operand.vmem [shape: f32[2,56,128], index: 3, kind: output, shape index: {}]  }
   0x1   :  { %s8_s14 = sshll.u32 %s841_s0, 4  ;;  %s9_s14 = int_to_ptr.vmem [resolvable:$true] %s8_s14 }
   0x2   :  { %s647_s15 = scalar_lea.vmem %s9_s14, 16  ;;  %p652_p1 = scmp.lt.s32.totalorder %s9_s14, %s9_s14 }
   0x3   :  { %p648_p0 = scmp.ne.s32.totalorder %s9_s14, %s647_s15  ;;  %p653_p2 = scmp.lt.s32.totalorder %s647_s15, %s647_s15 }
   0x5   :  { %p654_p3 = por %p653_p2, %p652_p1 }
   0x7   :  { %p655_p4 = pnand %p654_p3, %p648_p0 }
   0x9   :  { %658 = shalt.err (!%p655_p4)  }
   0xa   :  { %s701_s16 = smov [#allocation3]  }
   0xb   :  { %11 = dma.vmem_to_smem %s9_s14, 16, %s701_s16, [#allocation2] }
   0xc   :  { %679 = dma.done.wait [#allocation2], 16 }
   0xd   :  { %680 = vsyncadd [#allocation2], 4294967280 }
   0xe   :  { %13 = sfence }
   0xf   :  { %s726_s17 = smov 0   ;;  %s728_s18 = smov 0  }
  0x10   :  { %s730_s19 = smov 0   ;;  %s732_s0 = smov 0  }
  0x11   :  { %s734_s20 = smov 0  }
  0x12 LB: > { %s31_s21 = sadd.s32 1, %s691_s19  ;;  %s38_s22 = sadd.s32 1, %s695_s0  ;;  %s699_s20 = sphi %s734_s20, %s19_s20   ;;  %s695_s0 = sphi %s732_s0, %s848_s0   ;;  %s691_s19 = sphi %s730_s19, %s847_s19   ;;  %s687_s18 = sphi %s728_s18, %s846_s18   ;;  %s683_s17 = sphi %s726_s17, %s845_s17  }
  0x13   : > { %p32_p5 = scmp.ge.s32.totalorder %s31_s21, 3  ;;  %p519_p6 = scmp.ge.s32.totalorder %s699_s20, 1 }
  0x14   : > { %p155_p7 = scmp.lt.s32.totalorder %s699_s20, 7 }
  0x15   : > { %s850_s21 = smov (%p32_p5, %s31_s21), 0  ;;  %s852_s22 = smov (!%p32_p5, %s38_s22), %s695_s0 }
  0x16   : > { %p156_p8 = pnand %p519_p6, %p155_p7  ;;  %p40_p9 = scmp.ge.s32.totalorder %s852_s22, 2 }
  0x17   : > { %p188_p10 = scmp.lt.s32.totalorder (!%p156_p8), %s687_s18, 1  ;;  %p190_p11 = scmp.lt.s32.totalorder (!%p156_p8), %s683_s17, 2 }
  0x18   : > { %s854_s22 = smov (%p40_p9, %s852_s22), 0  ;;  %159 = sbr.rel (%p156_p8) target bundleno = 304 (0x130), region = 28 }
  0x19   : > { %p522_p12 = scmp.ne.s32.totalorder (!%p156_p8), %s683_s17, 0 }
  0x1f   : > { %s189_s23 = scalar_select %p188_p10, %s687_s18, 1 }
  0x20   : > { %s191_s24 = scalar_select %p190_p11, %s683_s17, 2 }
  0x21   : > { %s591_s25 = smul.u32 21, %s189_s23  ;;  %v702_v0 = vmov (!%p522_p12), -inf  }
  0x22   : > { %s590_s26 = smul.u32 7, %s191_s24 }
  0x23   : > { %s592_s27 = smul.u32 56, %s189_s23 }
  0x24   : > { %s194_s28 = sadd.s32 %s591_s25, %s590_s26  ;;  %213 = sbr.rel (%p522_p12) target bundleno = 43 (0x2b), region = 32 }
  0x25   : > { %s520_s29 = sshll.u32 %s194_s28, 2  ;;  %s767_s5 = scalar_lea.vmem %s844_s3, %s592_s27 }
  0x26   : > { %s772_s8 = scalar_lea.vmem %s842_s1, %s520_s29  ;;  %214 = vst [vmem:[%s767_s5] sm:$0xff] (!%p522_p12), %v702_v0  ;;  %215 = vst [vmem:[%s767_s5 + $0x8] sm:$0xff] (!%p522_p12), %v702_v0 }
  0x27   : > { %216 = vst [vmem:[%s767_s5 + $0x10] sm:$0xff] (!%p522_p12), %v702_v0  ;;  %217 = vst [vmem:[%s767_s5 + $0x18] sm:$0xff] (!%p522_p12), %v702_v0 }
  0x28   : > { %218 = vst [vmem:[%s767_s5 + $0x20] sm:$0xff] (!%p522_p12), %v702_v0  ;;  %219 = vst [vmem:[%s767_s5 + $0x28] sm:$0xff] (!%p522_p12), %v702_v0 }
  0x29   : > { %220 = vst [vmem:[%s767_s5 + $0x30] sm:$0xff] (!%p522_p12), %v702_v0 }
  0x2b PF: > { %s221_s9 = smul.u32 3, %s687_s18 }
  0x2d   : > { %s222_s10 = sadd.s32 %s683_s17, %s221_s9 }
  0x2e   : > { %s223_s11 = sld [smem:[#allocation3 + %s222_s10]] }
  0x34   : > { %p523_p13 = scmp.eq.s32.totalorder %s223_s11, 0 }
  0x35   : > { %v635_v1 = vld [vmem:[%s843_s2] sm:$0xff] (!%p523_p13)   ;;  %v636_v2 = vld [vmem:[%s843_s2 + $0x8] sm:$0xff] (!%p523_p13)   ;;  %v637_v3 = vld [vmem:[%s843_s2 + $0x10] sm:$0xff] (!%p523_p13)  }
  0x36   : > { %227 = sbr.rel (%p523_p13) target bundleno = 304 (0x130), region = 36  ;;  %550 = vmatprep.subr.bf16.mxu0 (!%p523_p13), %v635_v1  ;;  %574 = vmatprep.subr.bf16.mxu1 (!%p523_p13), %v635_v1  ;;  %v638_v4 = vld [vmem:[%s843_s2 + $0x18] sm:$0xff] (!%p523_p13)   ;;  %v643_v5 = vld [vmem:[%s772_s8] sm:$0xff] (!%p523_p13)   ;;  %v644_v6 = vld [vmem:[%s772_s8 + $0x10] sm:$0xff] (!%p523_p13)  }
  0x37   : > { %551 = vmatpush3.bf16.msra.mxu0 (!%p523_p13), %v635_v1  ;;  %582 = vmatpush3.bf16.msra.mxu1 (!%p523_p13), %v635_v1  ;;  %v639_v7 = vld [vmem:[%s843_s2 + $0x20] sm:$0xff] (!%p523_p13)   ;;  %v640_v8 = vld [vmem:[%s843_s2 + $0x28] sm:$0xff] (!%p523_p13)   ;;  %v641_v9 = vld [vmem:[%s843_s2 + $0x30] sm:$0xff] (!%p523_p13)  }
  0x38   : > { %552 = vmatprep.subr.bf16.mxu0 (!%p523_p13), %v636_v2  ;;  %575 = vmatprep.subr.bf16.mxu1 (!%p523_p13), %v636_v2  ;;  %v642_v10 = vld [vmem:[%s843_s2 + $0x38] sm:$0xff] (!%p523_p13)   ;;  %v645_v11 = vld [vmem:[%s772_s8 + $0x8] sm:$0xff] (!%p523_p13)   ;;  %v387_v13 = vld [vmem:[%s767_s5 + $0x10] sm:$0xff] (!%p523_p13) }
  0x39   : > { %566 = vmatprep.mubr.bf16.mxu0 (!%p523_p13), %v643_v5  ;;  %570 = vmatprep.mubr.bf16.mxu1 (!%p523_p13), %v644_v6  ;;  %v646_v12 = vld [vmem:[%s772_s8 + $0x18] ss:$0 sps:$4 sm:$0xff] (!%p523_p13)   ;;  %v391_v14 = vld [vmem:[%s767_s5 + $0x30] sm:$0xff] (!%p523_p13)  ;;  %v385_v15 = vld [vmem:[%s767_s5] sm:$0xff] (!%p523_p13) }
  0x3a   : > { %v389_v16 = vld [vmem:[%s767_s5 + $0x20] sm:$0xff] (!%p523_p13)  ;;  %v388_v19 = vld [vmem:[%s767_s5 + $0x18] sm:$0xff] (!%p523_p13)  ;;  %v386_v24 = vld [vmem:[%s767_s5 + $0x8] sm:$0xff] (!%p523_p13) }
  0x3b   : > { %553 = vmatpush3.bf16.msra.mxu0 (!%p523_p13), %v636_v2  ;;  %583 = vmatpush3.bf16.msra.mxu1 (!%p523_p13), %v636_v2  ;;  %v390_v25 = vld [vmem:[%s767_s5 + $0x28] sm:$0xff] (!%p523_p13) }
  0x3c   : > { %554 = vmatprep.subr.bf16.mxu0 (!%p523_p13), %v637_v3  ;;  %576 = vmatprep.subr.bf16.mxu1 (!%p523_p13), %v637_v3 }
  0x3f   : > { %555 = vmatpush3.bf16.msra.mxu0 %v637_v3  ;;  %584 = vmatpush3.bf16.msra.mxu1 %v637_v3 }
  0x40   : > { %556 = vmatprep.subr.bf16.mxu0 %v638_v4  ;;  %577 = vmatprep.subr.bf16.mxu1 %v638_v4 }
  0x43   : > { %557 = vmatpush3.bf16.msra.mxu0 %v638_v4  ;;  %585 = vmatpush3.bf16.msra.mxu1 %v638_v4 }
  0x44   : > { %558 = vmatprep.subr.bf16.mxu0 %v639_v7  ;;  %578 = vmatprep.subr.bf16.mxu1 %v639_v7 }
  0x47   : > { %559 = vmatpush3.bf16.msra.mxu0 %v639_v7  ;;  %586 = vmatpush3.bf16.msra.mxu1 %v639_v7 }
  0x48   : > { %560 = vmatprep.subr.bf16.mxu0 %v640_v8  ;;  %579 = vmatprep.subr.bf16.mxu1 %v640_v8 }
  0x4b   : > { %561 = vmatpush3.bf16.msra.mxu0 %v640_v8  ;;  %587 = vmatpush3.bf16.msra.mxu1 %v640_v8 }
  0x4c   : > { %562 = vmatprep.subr.bf16.mxu0 %v641_v9  ;;  %580 = vmatprep.subr.bf16.mxu1 %v641_v9 }
  0x4f   : > { %563 = vmatpush3.bf16.msra.mxu0 %v641_v9  ;;  %588 = vmatpush3.bf16.msra.mxu1 %v641_v9 }
  0x50   : > { %564 = vmatprep.subr.bf16.mxu0 %v642_v10  ;;  %581 = vmatprep.subr.bf16.mxu1 %v642_v10 }
  0x53   : > { %565 = vmatpush3.bf16.msra.mxu0 %v642_v10  ;;  %589 = vmatpush3.bf16.msra.mxu1 %v642_v10 }
  0x56   : > { %567 = vmatmul.mubr.bf16.vlgmr.msra.gmra.mrb[0].mxu0 %v645_v11  ;;  %571 = vmatmul.mubr.bf16.vlgmr.msra.gmra.mrb[0].mxu1 %v646_v12 }
 0x129   : > { %v568_v17 = vpop.f32.mrb[0].mxu0  ;;  %v572_v18 = vpop.f32.mrb[0].mxu1 }
 0x12a   : > { %v394_v20 = vmax.f32 %v387_v13, %v568_v17  ;;  %v398_v21 = vmax.f32 %v391_v14, %v572_v18  ;;  %v355_v22 = vpop.f32.mrb[1].mxu0  ;;  %v371_v23 = vpop.f32.mrb[1].mxu1 }
 0x12b   : > { %v392_v26 = vmax.f32 %v385_v15, %v355_v22  ;;  %v396_v27 = vmax.f32 %v389_v16, %v371_v23  ;;  %v569_v28 = vpop.f32.mrb[2].mxu0  ;;  %v573_v29 = vpop.f32.mrb[2].mxu1 }
 0x12c   : > { %401 = vst [vmem:[%s767_s5 + $0x10] sm:$0xff] %v394_v20  ;;  %405 = vst [vmem:[%s767_s5 + $0x30] sm:$0xff] %v398_v21  ;;  %v395_v30 = vmax.f32 %v388_v19, %v569_v28  ;;  %v358_v31 = vpop.f32.mrb[3].mxu0  ;;  %v374_v32 = vpop.f32.mrb[3].mxu1 }
 0x12d   : > { %399 = vst [vmem:[%s767_s5] sm:$0xff] %v392_v26  ;;  %403 = vst [vmem:[%s767_s5 + $0x20] sm:$0xff] %v396_v27  ;;  %v393_v33 = vmax.f32 %v386_v24, %v358_v31  ;;  %v397_v34 = vmax.f32 %v390_v25, %v374_v32 }
 0x12e   : > { %402 = vst [vmem:[%s767_s5 + $0x18] sm:$0xff] %v395_v30 }
 0x12f   : > { %400 = vst [vmem:[%s767_s5 + $0x8] sm:$0xff] %v393_v33  ;;  %404 = vst [vmem:[%s767_s5 + $0x28] sm:$0xff] %v397_v34 }
 0x130 PF: > { %s19_s20 = sadd.s32 1, %s699_s20   ;;  %s845_s17 = smov %s691_s19 }
 0x131   : > { %p16_p0 = scmp.ge.s32.totalorder %s19_s20, 8   ;;  %s846_s18 = smov %s695_s0 }
 0x132   : > { %s847_s19 = smov %s850_s21  ;;  %s848_s0 = smov %s854_s22 }
 0x133   :  { %18 = sbr.rel (!%p16_p0) target bundleno = 18 (0x12), region = 69 }

</bundles_post_ra>
